<compile_context>
chip_gen: v7x
topology: tpu7x:2x2x1
jax: 0.10.0
libtpu: 0.0.40
codegen_flags: <defaults>
</compile_context>

<pallas_src>
import math
from functools import partial

import jax
import jax.numpy as jnp
from jax.experimental import pallas as pl
from jax.experimental.pallas import tpu as pltpu


def _gau_kernel(wf_ref, wg_ref, out_ref, *, compute_dtype):
    wf = wf_ref[...].astype(compute_dtype)
    wg = wg_ref[...].astype(compute_dtype)
    # sigmoid(x) == 0.5 * tanh(0.5 * x) + 0.5  (exact; single EUP push)
    gate = 0.5 * jnp.tanh(0.5 * wg) + 0.5
    out_ref[...] = (jnp.tanh(wf) * gate).astype(out_ref.dtype)


_CHIP_GEN_CACHE = [None]


def _chip_generation() -> int:
    """Best-effort TPU generation detection (5/6/7); 0 if unknown."""
    if _CHIP_GEN_CACHE[0] is None:
        gen = 0
        try:
            kind = jax.devices()[0].device_kind.lower()
            for g in (7, 6, 5):
                if f"v{g}" in kind:
                    gen = g
                    break
        except Exception:
            gen = 0
        _CHIP_GEN_CACHE[0] = gen
    return _CHIP_GEN_CACHE[0]


def _pick_lane_width(total: int):
    for cand in (1024, 512, 256, 128):
        if total % cand == 0:
            return cand
    return None


def _gau_aligned_flat(wf_flat: jax.Array, wg_flat: jax.Array) -> jax.Array:
    """Kernel path for a flat array whose length is a multiple of 128."""
    total = wf_flat.shape[0]
    dtype = wf_flat.dtype
    itemsize = dtype.itemsize

    L = _pick_lane_width(total)
    rows = total // L
    wf2 = wf_flat.reshape(rows, L)
    wg2 = wg_flat.reshape(rows, L)

    gen = _chip_generation()

    # Generation-aware block size (bytes per array per block).
    target_block_bytes = 4 * 1024 * 1024 if gen >= 6 else 2 * 1024 * 1024

    # bf16-native math on v6e/v7x; f32 upcast elsewhere (safe on v5e).
    if dtype == jnp.bfloat16 and gen >= 6:
        compute_dtype = jnp.bfloat16
    else:
        compute_dtype = jnp.float32

    # Row-block size: sublane-aligned (multiple of 8) or the full row extent.
    br = max(8, (target_block_bytes // (L * itemsize)) // 8 * 8)
    br = min(br, rows)
    if rows >= 32:
        # Aim for >= 4 grid steps: enables software pipelining and gives an
        # even split across v7x's 2 TensorCores.
        quarter = (rows // 4) // 8 * 8
        if quarter >= 8:
            br = min(br, quarter)
    n_blocks = (rows + br - 1) // br

    block_bytes = br * L * itemsize
    vmem_limit = int(6 * block_bytes + 16 * 1024 * 1024)  # 2-buf x 3 arrays + headroom

    cost = pl.CostEstimate(
        flops=4 * total,
        transcendentals=2 * total,
        bytes_accessed=3 * total * itemsize,
    )

    kernel = partial(_gau_kernel, compute_dtype=compute_dtype)
    out2 = pl.pallas_call(
        kernel,
        out_shape=jax.ShapeDtypeStruct((rows, L), dtype),
        grid=(n_blocks,),
        in_specs=[
            pl.BlockSpec((br, L), lambda i: (i, 0)),
            pl.BlockSpec((br, L), lambda i: (i, 0)),
        ],
        out_specs=pl.BlockSpec((br, L), lambda i: (i, 0)),
        compiler_params=pltpu.CompilerParams(
            dimension_semantics=("parallel",),   # megacore sharding on v7x
            vmem_limit_bytes=vmem_limit,
        ),
        cost_estimate=cost,
    )(wf2, wg2)
    return out2.reshape(-1)


def gated_activation_unit(wf: jax.Array, wg: jax.Array) -> jax.Array:
    """tanh(wf) * sigmoid(wg) via a tiled, pipelined Pallas TPU kernel.

    wf, wg: arrays of identical shape and dtype (any rank; elementwise op).
    """
    assert wf.shape == wg.shape, "wf and wg must have the same shape"
    assert wf.dtype == wg.dtype, "wf and wg must have the same dtype"
    orig_shape = wf.shape
    total = math.prod(orig_shape) if orig_shape else 1

    main = (total // 128) * 128
    if main == 0:
        # Smaller than one vreg lane-row: kernel overhead not worth it.
        return (jnp.tanh(wf) * jax.nn.sigmoid(wg)).astype(wf.dtype)

    wf_flat = wf.reshape(-1)
    wg_flat = wg.reshape(-1)

    if main == total:
        # 128-aligned: everything through the kernel, zero pad/slice copies.
        return _gau_aligned_flat(wf_flat, wg_flat).reshape(orig_shape)

    # Misaligned: kernel on the 128-aligned head, trivial jnp on the tiny tail.
    head = _gau_aligned_flat(wf_flat[:main], wg_flat[:main])
    tail = (jnp.tanh(wf_flat[main:]) * jax.nn.sigmoid(wg_flat[main:])).astype(head.dtype)
    return jnp.concatenate([head, tail]).reshape(orig_shape)


if __name__ == "__main__":
    key = jax.random.PRNGKey(0)

    def ref_fn(wf, wg):
        return jnp.tanh(wf) * jax.nn.sigmoid(wg)

    k1, k2, k3, k4, k5, k6, k7, k8 = jax.random.split(key, 8)

    # --- Main small WaveNet-like check: batch=2, channels=4, seq=16 (NCT) ---
    N, C, T = 2, 4, 16
    wf = jax.random.normal(k1, (N, C, T), dtype=jnp.float32)
    wg = jax.random.normal(k2, (N, C, T), dtype=jnp.float32)
    out = gated_activation_unit(wf, wg)
    jax.block_until_ready(out)
    assert out.shape == (N, C, T)
    assert jnp.allclose(out, ref_fn(wf, wg), atol=1e-5, rtol=1e-5), \
        "mismatch vs reference (small)"

    # --- Multi-block grid check (rows=1280 -> 4 balanced blocks) ---
    N2, C2, T2 = 5, 128, 2048
    wf_b = jax.random.normal(k3, (N2, C2, T2), dtype=jnp.float32)
    wg_b = jax.random.normal(k4, (N2, C2, T2), dtype=jnp.float32)
    out_b = gated_activation_unit(wf_b, wg_b)
    jax.block_until_ready(out_b)
    assert out_b.shape == (N2, C2, T2)
    assert jnp.allclose(out_b, ref_fn(wf_b, wg_b), atol=1e-5, rtol=1e-5), \
        "mismatch vs reference (tiled)"

    # --- Misaligned-total check (total=1400 -> 1280-elem kernel head + jnp tail) ---
    wf_m = jax.random.normal(k5, (2, 7, 100), dtype=jnp.float32)
    wg_m = jax.random.normal(k6, (2, 7, 100), dtype=jnp.float32)
    out_m = gated_activation_unit(wf_m, wg_m)
    jax.block_until_ready(out_m)
    assert out_m.shape == (2, 7, 100)
    assert jnp.allclose(out_m, ref_fn(wf_m, wg_m), atol=1e-5, rtol=1e-5), \
        "mismatch vs reference (misaligned)"

    # --- bf16 check (native bf16 compute on v6e/v7x, f32 path on v5e) ---
    wf_h = jax.random.normal(k7, (2, 64, 512), dtype=jnp.bfloat16)
    wg_h = jax.random.normal(k8, (2, 64, 512), dtype=jnp.bfloat16)
    out_h = gated_activation_unit(wf_h, wg_h)
    jax.block_until_ready(out_h)
    assert out_h.shape == (2, 64, 512) and out_h.dtype == jnp.bfloat16
    ref_h = ref_fn(wf_h.astype(jnp.float32), wg_h.astype(jnp.float32))
    assert jnp.allclose(out_h.astype(jnp.float32), ref_h, atol=5e-2, rtol=5e-2), \
        "mismatch vs reference (bf16)"

    print("KERNEL_OK")
</pallas_src>

<mosaic_0001>
module attributes {stable_mosaic.version = 11 : i64} {
  func.func @_gau_kernel(%arg0: i32, %arg1: memref<1x128xf32, #tpu.memory_space<vmem>>, %arg2: memref<1x128xf32, #tpu.memory_space<vmem>>, %arg3: memref<1x128xf32, #tpu.memory_space<vmem>>) attributes {dimension_semantics = [#tpu.dimension_semantics<parallel>], iteration_bounds = array<i64: 1>, scalar_prefetch = 0 : i64, scratch_operands = 0 : i64, tpu.core_type = #tpu.core_type<tc>, window_params = [{transform_indices = @transform_0, window_bounds = array<i64: 1, 128>}, {transform_indices = @transform_1, window_bounds = array<i64: 1, 128>}, {transform_indices = @transform_2, window_bounds = array<i64: 1, 128>}]} {
    %c0 = arith.constant 0 : index
    %c0_0 = arith.constant 0 : index
    %0 = vector.load %arg1[%c0, %c0_0] : memref<1x128xf32, #tpu.memory_space<vmem>>, vector<1x128xf32>
    %c0_1 = arith.constant 0 : index
    %c0_2 = arith.constant 0 : index
    %1 = vector.load %arg2[%c0_1, %c0_2] : memref<1x128xf32, #tpu.memory_space<vmem>>, vector<1x128xf32>
    %cst = arith.constant 5.000000e-01 : f32
    %2 = vector.broadcast %cst : f32 to vector<1x128xf32>
    %3 = arith.mulf %2, %1 : vector<1x128xf32>
    %4 = math.tanh %3 : vector<1x128xf32>
    %cst_3 = arith.constant 5.000000e-01 : f32
    %5 = vector.broadcast %cst_3 : f32 to vector<1x128xf32>
    %6 = arith.mulf %5, %4 : vector<1x128xf32>
    %cst_4 = arith.constant 5.000000e-01 : f32
    %7 = vector.broadcast %cst_4 : f32 to vector<1x128xf32>
    %8 = arith.addf %6, %7 : vector<1x128xf32>
    %9 = math.tanh %0 : vector<1x128xf32>
    %10 = arith.mulf %9, %8 : vector<1x128xf32>
    %c0_5 = arith.constant 0 : index
    %c0_6 = arith.constant 0 : index
    %11 = vector.load %arg3[%c0_5, %c0_6] : memref<1x128xf32, #tpu.memory_space<vmem>>, vector<1x128xf32>
    tpu.vector_store %arg3[%c0_5, %c0_6], %10 {strides = array<i32>} : memref<1x128xf32, #tpu.memory_space<vmem>>, vector<1x128xf32>,
    return
  }
  func.func @transform_0(%arg0: i32) -> (i32, i32) {
    %c0_i32 = arith.constant 0 : i32
    %c0_i32_0 = arith.constant 0 : i32
    return %arg0, %c0_i32 : i32, i32
  }
  func.func @transform_1(%arg0: i32) -> (i32, i32) {
    %c0_i32 = arith.constant 0 : i32
    %c0_i32_0 = arith.constant 0 : i32
    return %arg0, %c0_i32 : i32, i32
  }
  func.func @transform_2(%arg0: i32) -> (i32, i32) {
    %c0_i32 = arith.constant 0 : i32
    %c0_i32_0 = arith.constant 0 : i32
    return %arg0, %c0_i32 : i32, i32
  }
}

</mosaic_0001>

<bundles_post_ra>
// kernel: tpu_custom_call.1
= control target key start
LH: loop header
LB: loop body
LE: loop exit
PB: predicated region body
PF: predicated region fallthrough
CT: control target
= control target key end

     0   :  { %7 = vsyncpa [#allocation3], 0  ;;  %s146_s0 = inlined_call_operand.hbm [shape: f32[1,128], index: 0, kind: input, shape index: {}]   ;;  %s147_s1 = inlined_call_operand.vmem [shape: f32[1,128], index: 1, kind: input, shape index: {}]   ;;  %s148_s2 = inlined_call_operand.hbm [shape: f32[1,128], index: 2, kind: output, shape index: {}]  }
   0x1   :  { %8 = vsyncpa [#allocation4], 0  ;;  %s102_s9 = smov [#allocation2]   ;;  %s54_s13 = scalar_lea.hbm %s146_s0, 16 }
   0x2   :  { %s15_s10 = sshll.u32 %s102_s9, 4  ;;  %p55_p0 = scmp.ne.s32.totalorder %s146_s0, %s54_s13  ;;  %s16_s10 = int_to_ptr.vmem [resolvable:$true] %s15_s10 }
   0x3   :  { %p58_p1 = scmp.lt.u32.totalorder %s54_s13, %s146_s0 }
   0x5   :  { %p60_p2 = pnand %p58_p1, %p55_p0 }
   0x7   :  { %63 = shalt.err (!%p60_p2)
}
   0x8   :  { %s64_s18 = scalar_lea.vmem %s16_s10, 16  ;;  %s68_s19 = scalar_lea.vmem %s16_s10, 32 }
   0x9   :  { %p65_p3 = scmp.ne.s32.totalorder %s16_s10, %s64_s18  ;;  %p69_p4 = scmp.lt.s32.totalorder %s16_s10, %s16_s10 }
   0xa   :  { %p70_p5 = scmp.lt.s32.totalorder %s68_s19, %s64_s18 }
   0xc   :  { %p71_p6 = por %p70_p5, %p69_p4 }
   0xe   :  { %p72_p7 = pnand %p71_p6, %p65_p3 }
  0x10   :  { %75 = shalt.err (!%p72_p7)
}
  0x11   :  { %18 = dma.hbm_to_vmem [thread:$0]  %s146_s0, 16, %s16_s10, [#allocation3]  }
  0x12   :  { %98 = dma.done.wait [#allocation3], 16  }
  0x13   :  { %99 = vsyncadd [#allocation3], 4294967280  ;;  %v25_v0 = vld [vmem:[%s147_s1] sm:$0x1]  ;;  %s103_s24 = smov [#allocation5]  }
  0x14   :  { %v26_v1 = vmul.f32 0.5, %v25_v0  ;;  %v24_v2 = vld [vmem:[#allocation2] sm:$0x1]  ;;  %s39_s25 = sshll.u32 %s103_s24, 4  ;;  %s40_s25 = int_to_ptr.vmem [resolvable:$true] %s39_s25 }
  0x15   :  { %s76_s0 = scalar_lea.vmem %s40_s25, 16  ;;  %s80_s26 = scalar_lea.vmem %s40_s25, 32 }
  0x16   :  { %50 = vtanh.f32 %v26_v1  ;;  %p77_p8 = scmp.ne.s32.totalorder %s40_s25, %s76_s0  ;;  %p81_p9 = scmp.lt.s32.totalorder %s40_s25, %s40_s25 }
  0x17   :  { %52 = vtanh.f32 %v24_v2  ;;  %p82_p10 = scmp.lt.s32.totalorder %s80_s26, %s76_s0 }
  0x19   :  { %p83_p11 = por %p82_p10, %p81_p9 }
  0x1b   :  { %p84_p12 = pnand %p83_p11, %p77_p8 }
  0x20   :  { %v51_v3 = vpop.eup %50 }
  0x21   :  { %v28_v4 = vmul.f32 0.5, %v51_v3  ;;  %v53_v5 = vpop.eup %52 }
  0x23   :  { %v29_v6 = vadd.f32 0.5, %v28_v4 }
  0x25   :  { %v31_v7 = vmul.f32 %v53_v5, %v29_v6 }
  0x27   :  { %32 = vst [vmem:[#allocation5] sm:$0x1] %v31_v7 }
  0x28   :  { %87 = shalt.err (!%p84_p12)
}
  0x29   :  { %s88_s28 = scalar_lea.hbm %s148_s2, 16 }
  0x2a   :  { %p89_p13 = scmp.ne.s32.totalorder %s148_s2, %s88_s28  ;;  %p92_p0 = scmp.lt.u32.totalorder %s88_s28, %s148_s2 }
  0x2c   :  { %p94_p1 = pnand %p92_p0, %p89_p13 }
  0x2e   :  { %97 = shalt.err (!%p94_p1)
}
  0x2f   :  { %42 = dma.vmem_to_hbm [thread:$0]  %s40_s25, 16, %s148_s2, [#allocation4]  }
  0x30   :  { %100 = dma.done.wait [#allocation4], 16  }
  0x31   :  { %101 = vsyncadd [#allocation4], 4294967280 }
  0x32   :  { %46 = vsyncpa [#allocation3], 1 }
  0x33   :  { %47 = vsyncpa [#allocation4], 1 }

</bundles_post_ra>
